<compile_context>
chip_gen: v6e
topology: v6e:2x2x1
jax: 0.10.0
libtpu: 0.0.40
codegen_flags: <defaults>
</compile_context>

<pallas_src>
import math

import jax
import jax.numpy as jnp
from jax import lax
from jax.experimental import pallas as pl
from jax.experimental.pallas import tpu as pltpu


def _relora_kernel(x_ref, w_ref, a_ref, b_ref, bias_ref, o_ref, xa_ref, acc_ref):
    # x:    (tm, tk)   W: (tn, tk)   A: (r, tk)   B(scaled, transposed): (r, tn)
    # bias: (1, tn)    out: (tm, tn)
    j = pl.program_id(1)          # out-feature tile index
    k = pl.program_id(2)          # in-feature (reduction) tile index
    nk = pl.num_programs(2)

    x = x_ref[...]                # native dtype straight into the MXU

    @pl.when(k == 0)
    def _init_acc():
        acc_ref[...] = jnp.zeros_like(acc_ref)

    # Frozen base linear: x @ W^T.  W kept in its natural (out, in) layout;
    # contraction on the last dims of both operands -> no transpose anywhere.
    acc_ref[...] += lax.dot_general(
        x, w_ref[...], (((1,), (1,)), ((), ())),
        preferred_element_type=jnp.float32)

    # LoRA first matmul: xa = x @ A^T, computed only for the first out tile of
    # each row tile and accumulated over the K axis into a persistent scratch.
    @pl.when(jnp.logical_and(j == 0, k == 0))
    def _init_xa():
        xa_ref[...] = jnp.zeros_like(xa_ref)

    @pl.when(j == 0)
    def _acc_xa():
        xa_ref[...] += lax.dot_general(
            x, a_ref[...], (((1,), (1,)), ((), ())),
            preferred_element_type=jnp.float32)

    # Finalize on the last K step: apply scaled B (kept f32 to avoid the
    # intermediate downcast), add bias, write the output tile once.
    @pl.when(k == nk - 1)
    def _finalize():
        lora = jnp.dot(xa_ref[...], b_ref[...].astype(jnp.float32),
                       preferred_element_type=jnp.float32)
        o_ref[...] = (acc_ref[...] + lora
                      + bias_ref[...].astype(jnp.float32)).astype(o_ref.dtype)


def _padded_block_bytes(shape, dtype):
    """VMEM footprint of one block including lane (128) / sublane (8*packing) padding."""
    itemsize = jnp.dtype(dtype).itemsize
    packing = max(1, 4 // itemsize)
    shape = tuple(int(d) for d in shape)
    if len(shape) < 2:
        shape = (1,) * (2 - len(shape)) + shape
    lead = 1
    for d in shape[:-2]:
        lead *= d
    sub = -(-shape[-2] // (8 * packing)) * (8 * packing)
    lane = -(-shape[-1] // 128) * 128
    return lead * sub * lane * itemsize


def relora_linear(x, weight, bias, lora_A, lora_B, *, lora_alpha=1,
                  tm=256, tn=512, tk=512, vmem_limit_bytes=None):
    """ReLoRaLinear forward (eval mode, non-quantized, lora_only=False).

    x: (..., in_features) -> (..., out_features)
    weight: (out, in), bias: (out,) or None, lora_A: (r, in), lora_B: (out, r).

    Tile-plan guidance (bf16, K ~ 8k):
      v5e : tm=256-512,  tn multiple of 128; vmem_limit must be raised (16 MiB default).
      v6e : tm=512-1024, tn=512-1024; vmem_limit up to ~100 MiB (128 MiB physical).
      v7x : tm=256-384,  tn=512; keep the VMEM estimate <= ~56 MiB (64 MiB physical).
            If there are few row tiles (decode), prefer sharding the N axis across
            the two TensorCores and drop the xa cache instead.
    """
    in_features = x.shape[-1]
    out_features, _ = weight.shape
    r = lora_A.shape[0]
    scaling = float(lora_alpha) / float(r)

    if bias is None:
        bias = jnp.zeros((out_features,), dtype=x.dtype)

    M = 1
    for d in x.shape[:-1]:
        M *= d
    x2d = x.reshape(M, in_features)

    # Fold the LoRA scale into B once and store it lane-dense as (r, out).
    # This is an O(out*r) tensor (tiny), unlike the O(out*in) weight the
    # review flagged; no weight-sized transpose is ever materialized.
    b_t_scaled = (lora_B * scaling).T            # (r, out)
    bias2d = bias.reshape(1, out_features)

    # Adapt tiles to small layers; ragged last M / N blocks use masked writes.
    tm_eff = min(tm, M)
    tn_eff = min(tn, out_features)
    tk_eff = min(tk, in_features)
    if in_features % tk_eff != 0:
        # K is the reduction axis: a ragged K block would let undefined padded
        # values contaminate valid outputs, so fall back to an untiled K.
        tk_eff = in_features

    assert tm_eff == M or tm_eff % 16 == 0, "tm must be a multiple of 16"
    assert tn_eff == out_features or tn_eff % 128 == 0, "tn must be a multiple of 128"
    assert tk_eff == in_features or tk_eff % 128 == 0, "tk must be a multiple of 128"

    grid = (pl.cdiv(M, tm_eff), pl.cdiv(out_features, tn_eff), in_features // tk_eff)

    if vmem_limit_bytes is None:
        blocks = (
            _padded_block_bytes((tm_eff, tk_eff), x.dtype)          # x tile
            + _padded_block_bytes((tn_eff, tk_eff), weight.dtype)   # W tile
            + _padded_block_bytes((r, tk_eff), lora_A.dtype)        # A tile
            + _padded_block_bytes((r, tn_eff), b_t_scaled.dtype)    # B tile
            + _padded_block_bytes((1, tn_eff), bias2d.dtype)        # bias tile
            + _padded_block_bytes((tm_eff, tn_eff), x.dtype)        # out tile
        )
        scratch = (_padded_block_bytes((tm_eff, r), jnp.float32)
                   + _padded_block_bytes((tm_eff, tn_eff), jnp.float32))
        est = 2 * blocks + scratch + (4 << 20)                      # x2 double-buffering
        vmem_limit_bytes = int(min(max(est, 32 << 20), 96 << 20))

    out2d = pl.pallas_call(
        _relora_kernel,
        out_shape=jax.ShapeDtypeStruct((M, out_features), x.dtype),
        grid_spec=pltpu.PrefetchScalarGridSpec(
            num_scalar_prefetch=0,
            grid=grid,
            in_specs=[
                pl.BlockSpec((tm_eff, tk_eff), lambda i, j, k: (i, k)),   # x
                pl.BlockSpec((tn_eff, tk_eff), lambda i, j, k: (j, k)),   # W (out, in)
                pl.BlockSpec((r, tk_eff), lambda i, j, k: (0, k)),        # lora_A (r, in)
                pl.BlockSpec((r, tn_eff), lambda i, j, k: (0, j)),        # lora_B*scale (r,out)
                pl.BlockSpec((1, tn_eff), lambda i, j, k: (0, j)),        # bias
            ],
            out_specs=pl.BlockSpec((tm_eff, tn_eff), lambda i, j, k: (i, j)),
            scratch_shapes=[
                pltpu.VMEM((tm_eff, r), jnp.float32),       # xa cache (per row tile)
                pltpu.VMEM((tm_eff, tn_eff), jnp.float32),  # f32 base accumulator
            ],
        ),
        compiler_params=pltpu.CompilerParams(
            # Only the M axis is megacore-sharded: the xa cache is valid only if
            # each core sees j == 0 for every row tile it owns.
            dimension_semantics=("parallel", "arbitrary", "arbitrary"),
            vmem_limit_bytes=vmem_limit_bytes,
        ),
    )(x2d, weight, lora_A, b_t_scaled, bias2d)

    return out2d.reshape(x.shape[:-1] + (out_features,))


if __name__ == "__main__":
    # --- Test 1: small shapes consistent with the module hyper-params --------
    in_features, out_features, r, lora_alpha = 32, 64, 8, 4
    batch, seq = 2, 8

    key = jax.random.PRNGKey(0)
    kx, kw, kb, ka, kbb = jax.random.split(key, 5)

    x = jax.random.normal(kx, (batch, seq, in_features), dtype=jnp.float32)
    # Frozen weight defaults to zeros in the module; use small random values so
    # the base path is exercised non-trivially.
    weight = jax.random.normal(kw, (out_features, in_features), dtype=jnp.float32) * 0.05
    bias = jax.random.normal(kb, (out_features,), dtype=jnp.float32) * 0.01
    # lora_A: kaiming_uniform_(a=sqrt(5)) -> U(-1/sqrt(fan_in), +1/sqrt(fan_in))
    bound_a = 1.0 / math.sqrt(in_features)
    lora_A = jax.random.uniform(ka, (r, in_features), dtype=jnp.float32,
                                minval=-bound_a, maxval=bound_a)
    # lora_B is zero-init in the module; use small values so the LoRA branch counts.
    lora_B = jax.random.normal(kbb, (out_features, r), dtype=jnp.float32) * 0.02

    y = relora_linear(x, weight, bias, lora_A, lora_B, lora_alpha=lora_alpha)
    y = jax.block_until_ready(y)

    scaling = lora_alpha / r
    ref = (jnp.einsum("bsi,oi->bso", x, weight) + bias[None, None, :]
           + jnp.einsum("bsr,or->bso",
                        jnp.einsum("bsi,ri->bsr", x, lora_A), lora_B) * scaling)
    assert y.shape == (batch, seq, out_features)
    assert jnp.allclose(y, ref, atol=1e-4, rtol=1e-4), "mismatch vs reference (test 1)"

    # --- Test 2: exercises M/N/K tiling, partial row block, xa caching -------
    in2, out2, r2, alpha2 = 256, 384, 16, 32
    b2, s2 = 1, 200                      # M = 200 -> one full 128-row tile + 72-row partial
    k2 = jax.random.PRNGKey(1)
    kx2, kw2, kb2, ka2, kbb2 = jax.random.split(k2, 5)
    x2 = jax.random.normal(kx2, (b2, s2, in2), dtype=jnp.float32)
    w2 = jax.random.normal(kw2, (out2, in2), dtype=jnp.float32) * 0.02
    bias2 = jax.random.normal(kb2, (out2,), dtype=jnp.float32) * 0.01
    A2 = jax.random.uniform(ka2, (r2, in2), dtype=jnp.float32,
                            minval=-1.0 / math.sqrt(in2), maxval=1.0 / math.sqrt(in2))
    B2 = jax.random.normal(kbb2, (out2, r2), dtype=jnp.float32) * 0.02

    y2 = relora_linear(x2, w2, bias2, A2, B2, lora_alpha=alpha2,
                       tm=128, tn=128, tk=128)
    y2 = jax.block_until_ready(y2)
    sc2 = alpha2 / r2
    ref2 = (jnp.einsum("bsi,oi->bso", x2, w2) + bias2[None, None, :]
            + jnp.einsum("bsr,or->bso",
                         jnp.einsum("bsi,ri->bsr", x2, A2), B2) * sc2)
    assert y2.shape == (b2, s2, out2)
    assert jnp.allclose(y2, ref2, atol=2e-2, rtol=2e-2), "mismatch vs reference (test 2)"

    print("KERNEL_OK")
</pallas_src>

<mosaic_0001>
module attributes {stable_mosaic.version = 11 : i64} {
  func.func @_relora_kernel(%arg0: i32, %arg1: i32, %arg2: i32, %arg3: memref<16x32xf32, #tpu.memory_space<vmem>>, %arg4: memref<64x32xf32, #tpu.memory_space<vmem>>, %arg5: memref<8x32xf32, #tpu.memory_space<vmem>>, %arg6: memref<8x64xf32, #tpu.memory_space<vmem>>, %arg7: memref<1x64xf32, #tpu.memory_space<vmem>>, %arg8: memref<16x64xf32, #tpu.memory_space<vmem>>, %arg9: memref<16x8xf32, #tpu.memory_space<vmem>>, %arg10: memref<16x64xf32, #tpu.memory_space<vmem>>) attributes {dimension_semantics = [#tpu.dimension_semantics<parallel>, #tpu.dimension_semantics<arbitrary>, #tpu.dimension_semantics<arbitrary>], iteration_bounds = array<i64: 1, 1, 1>, scalar_prefetch = 0 : i64, scratch_operands = 2 : i64, tpu.core_type = #tpu.core_type<tc>, window_params = [{transform_indices = @transform_0, window_bounds = array<i64: 16, 32>}, {transform_indices = @transform_1, window_bounds = array<i64: 64, 32>}, {transform_indices = @transform_2, window_bounds = array<i64: 8, 32>}, {transform_indices = @transform_3, window_bounds = array<i64: 8, 64>}, {transform_indices = @transform_4, window_bounds = array<i64: 1, 64>}, {transform_indices = @transform_5, window_bounds = array<i64: 16, 64>}]} {
    %c0 = arith.constant 0 : index
    %c0_0 = arith.constant 0 : index
    %0 = vector.load %arg3[%c0, %c0_0] : memref<16x32xf32, #tpu.memory_space<vmem>>, vector<16x32xf32>
    %c0_i32 = arith.constant 0 : i32
    %1 = arith.cmpi eq, %arg2, %c0_i32 : i32
    %2 = arith.extui %1 : i1 to i32
    %c0_i32_1 = arith.constant 0 : i32
    %3 = arith.cmpi ne, %2, %c0_i32_1 : i32
    scf.if %3 {
      %cst_15 = arith.constant 0.000000e+00 : f32
      %20 = vector.broadcast %cst_15 : f32 to vector<16x64xf32>
      %c0_16 = arith.constant 0 : index
      %c0_17 = arith.constant 0 : index
      %21 = vector.load %arg10[%c0_16, %c0_17] : memref<16x64xf32, #tpu.memory_space<vmem>>, vector<16x64xf32>
      tpu.vector_store %arg10[%c0_16, %c0_17], %20 {strides = array<i32>} : memref<16x64xf32, #tpu.memory_space<vmem>>, vector<16x64xf32>,
    } else {
    }
    %c0_2 = arith.constant 0 : index
    %c0_3 = arith.constant 0 : index
    %4 = vector.load %arg10[%c0_2, %c0_3] : memref<16x64xf32, #tpu.memory_space<vmem>>, vector<16x64xf32>
    %c0_4 = arith.constant 0 : index
    %c0_5 = arith.constant 0 : index
    %5 = vector.load %arg4[%c0_4, %c0_5] : memref<64x32xf32, #tpu.memory_space<vmem>>, vector<64x32xf32>
    %cst = arith.constant dense<0.000000e+00> : vector<16x64xf32>
    %6 = tpu.matmul %0, %5, %cst {dimension_numbers = #tpu.dot_dimension_numbers<[1], [1], [0], [0], [0, 0, 1, 0], [], []>} : vector<16x32xf32>, vector<64x32xf32>, vector<16x64xf32> -> vector<16x64xf32>
    %7 = arith.addf %4, %6 : vector<16x64xf32>
    %c0_6 = arith.constant 0 : index
    %c0_7 = arith.constant 0 : index
    %8 = vector.load %arg10[%c0_6, %c0_7] : memref<16x64xf32, #tpu.memory_space<vmem>>, vector<16x64xf32>
    tpu.vector_store %arg10[%c0_6, %c0_7], %7 {strides = array<i32>} : memref<16x64xf32, #tpu.memory_space<vmem>>, vector<16x64xf32>,
    %c0_i32_8 = arith.constant 0 : i32
    %9 = arith.cmpi eq, %arg1, %c0_i32_8 : i32
    %c0_i32_9 = arith.constant 0 : i32
    %10 = arith.cmpi eq, %arg2, %c0_i32_9 : i32
    %11 = arith.andi %9, %10 : i1
    %12 = arith.extui %11 : i1 to i32
    %c0_i32_10 = arith.constant 0 : i32
    %13 = arith.cmpi ne, %12, %c0_i32_10 : i32
    scf.if %13 {
      %cst_15 = arith.constant 0.000000e+00 : f32
      %20 = vector.broadcast %cst_15 : f32 to vector<16x8xf32>
      %c0_16 = arith.constant 0 : index
      %c0_17 = arith.constant 0 : index
      %21 = vector.load %arg9[%c0_16, %c0_17] : memref<16x8xf32, #tpu.memory_space<vmem>>, vector<16x8xf32>
      tpu.vector_store %arg9[%c0_16, %c0_17], %20 {strides = array<i32>} : memref<16x8xf32, #tpu.memory_space<vmem>>, vector<16x8xf32>,
    } else {
    }
    %c0_i32_11 = arith.constant 0 : i32
    %14 = arith.cmpi eq, %arg1, %c0_i32_11 : i32
    %15 = arith.extui %14 : i1 to i32
    %c0_i32_12 = arith.constant 0 : i32
    %16 = arith.cmpi ne, %15, %c0_i32_12 : i32
    scf.if %16 {
      %c0_15 = arith.constant 0 : index
      %c0_16 = arith.constant 0 : index
      %20 = vector.load %arg9[%c0_15, %c0_16] : memref<16x8xf32, #tpu.memory_space<vmem>>, vector<16x8xf32>
      %c0_17 = arith.constant 0 : index
      %c0_18 = arith.constant 0 : index
      %21 = vector.load %arg5[%c0_17, %c0_18] : memref<8x32xf32, #tpu.memory_space<vmem>>, vector<8x32xf32>
      %cst_19 = arith.constant dense<0.000000e+00> : vector<16x8xf32>
      %22 = tpu.matmul %0, %21, %cst_19 {dimension_numbers = #tpu.dot_dimension_numbers<[1], [1], [0], [0], [0, 0, 1, 0], [], []>} : vector<16x32xf32>, vector<8x32xf32>, vector<16x8xf32> -> vector<16x8xf32>
      %23 = arith.addf %20, %22 : vector<16x8xf32>
      %c0_20 = arith.constant 0 : index
      %c0_21 = arith.constant 0 : index
      %24 = vector.load %arg9[%c0_20, %c0_21] : memref<16x8xf32, #tpu.memory_space<vmem>>, vector<16x8xf32>
      tpu.vector_store %arg9[%c0_20, %c0_21], %23 {strides = array<i32>} : memref<16x8xf32, #tpu.memory_space<vmem>>, vector<16x8xf32>,
    } else {
    }
    %c0_i32_13 = arith.constant 0 : i32
    %17 = arith.cmpi eq, %arg2, %c0_i32_13 : i32
    %18 = arith.extui %17 : i1 to i32
    %c0_i32_14 = arith.constant 0 : i32
    %19 = arith.cmpi ne, %18, %c0_i32_14 : i32
    scf.if %19 {
      %c0_15 = arith.constant 0 : index
      %c0_16 = arith.constant 0 : index
      %20 = vector.load %arg9[%c0_15, %c0_16] : memref<16x8xf32, #tpu.memory_space<vmem>>, vector<16x8xf32>
      %c0_17 = arith.constant 0 : index
      %c0_18 = arith.constant 0 : index
      %21 = vector.load %arg6[%c0_17, %c0_18] : memref<8x64xf32, #tpu.memory_space<vmem>>, vector<8x64xf32>
      %cst_19 = arith.constant dense<0.000000e+00> : vector<16x64xf32>
      %22 = tpu.matmul %20, %21, %cst_19 {dimension_numbers = #tpu.dot_dimension_numbers<[1], [0], [0], [1], [0, 0, 1, 1], [], []>} : vector<16x8xf32>, vector<8x64xf32>, vector<16x64xf32> -> vector<16x64xf32>
      %c0_20 = arith.constant 0 : index
      %c0_21 = arith.constant 0 : index
      %23 = vector.load %arg10[%c0_20, %c0_21] : memref<16x64xf32, #tpu.memory_space<vmem>>, vector<16x64xf32>
      %24 = arith.addf %23, %22 : vector<16x64xf32>
      %c0_22 = arith.constant 0 : index
      %c0_23 = arith.constant 0 : index
      %25 = vector.load %arg7[%c0_22, %c0_23] : memref<1x64xf32, #tpu.memory_space<vmem>>, vector<1x64xf32>
      %26 = vector.broadcast %25 : vector<1x64xf32> to vector<16x64xf32>
      %27 = arith.addf %24, %26 : vector<16x64xf32>
      %c0_24 = arith.constant 0 : index
      %c0_25 = arith.constant 0 : index
      %28 = vector.load %arg8[%c0_24, %c0_25] : memref<16x64xf32, #tpu.memory_space<vmem>>, vector<16x64xf32>
      tpu.vector_store %arg8[%c0_24, %c0_25], %27 {strides = array<i32>} : memref<16x64xf32, #tpu.memory_space<vmem>>, vector<16x64xf32>,
    } else {
    }
    return
  }
  func.func @transform_0(%arg0: i32, %arg1: i32, %arg2: i32) -> (i32, i32) {
    %c0_i32 = arith.constant 0 : i32
    return %arg0, %arg2 : i32, i32
  }
  func.func @transform_1(%arg0: i32, %arg1: i32, %arg2: i32) -> (i32, i32) {
    %c0_i32 = arith.constant 0 : i32
    return %arg1, %arg2 : i32, i32
  }
  func.func @transform_2(%arg0: i32, %arg1: i32, %arg2: i32) -> (i32, i32) {
    %c0_i32 = arith.constant 0 : i32
    %c0_i32_0 = arith.constant 0 : i32
    return %c0_i32, %arg2 : i32, i32
  }
  func.func @transform_3(%arg0: i32, %arg1: i32, %arg2: i32) -> (i32, i32) {
    %c0_i32 = arith.constant 0 : i32
    %c0_i32_0 = arith.constant 0 : i32
    return %c0_i32, %arg1 : i32, i32
  }
  func.func @transform_4(%arg0: i32, %arg1: i32, %arg2: i32) -> (i32, i32) {
    %c0_i32 = arith.constant 0 : i32
    %c0_i32_0 = arith.constant 0 : i32
    return %c0_i32, %arg1 : i32, i32
  }
  func.func @transform_5(%arg0: i32, %arg1: i32, %arg2: i32) -> (i32, i32) {
    %c0_i32 = arith.constant 0 : i32
    return %arg0, %arg1 : i32, i32
  }
}

</mosaic_0001>

<bundles_post_ra>
// kernel: tpu_custom_call.1
= control target key start
LH: loop header
LB: loop body
LE: loop exit
PB: predicated region body
PF: predicated region fallthrough
CT: control target
= control target key end

     0   :  { %vm40_vm0 = vcmask 261120   ;;  %vm156_vm1 = vcmask 64512   ;;  %v454_v4 = vmov 0.0   ;;  %s564_s0 = inlined_call_operand.vmem [shape: f32[16,32], index: 0, kind: input, shape index: {}]   ;;  %s565_s1 = inlined_call_operand.vmem [shape: f32[64,32], index: 1, kind: input, shape index: {}]   ;;  %s566_s2 = inlined_call_operand.vmem [shape: f32[8,32], index: 2, kind: input, shape index: {}]   ;;  %s567_s3 = inlined_call_operand.vmem [shape: f32[8,64], index: 3, kind: input, shape index: {}]   ;;  %s568_s4 = inlined_call_operand.vmem [shape: f32[1,64], index: 4, kind: input, shape index: {}]   ;;  %s569_s5 = inlined_call_operand.hbm [shape: f32[16,64], index: 5, kind: output, shape index: {}]  }
   0x1   :  { %v164_v0 = vld [vmem:[%s566_s2] sm:$0xff]  ;;  %v39_v2 = vld [vmem:[%s565_s1 + $0x38] sm:$0xff]  ;;  %v38_v3 = vld [vmem:[%s565_s1 + $0x30] sm:$0xff]  ;;  %158 = vst.msk [vmem:[#allocation2 + $0x8] sm:$0xff] %vm156_vm1, %v454_v4 }
   0x2   :  { %v21_v1 = vld [vmem:[%s564_s0] sm:$0xff]  ;;  %418 = vmatprep.subr.msk.mxu1 %vm40_vm0, %v164_v0  ;;  %157 = vst.msk [vmem:[#allocation2] sm:$0xff] %vm156_vm1, %v454_v4  ;;  %v22_v5 = vld [vmem:[%s564_s0 + $0x8] sm:$0xff]  ;;  %399 = vmatprep.subr.msk.mxu0 %vm40_vm0, %v39_v2 }
   0x3   :  { %420 = vmatprep.mubr.msk.f32.mxu1 %vm40_vm0, %v21_v1  ;;  %419 = vmatpush3.xpose.msk.msra.mxu1 %vm40_vm0, %v164_v0 }
   0x4   :  { %400 = vmatpush3.xpose.msk.msra.mxu0 %vm40_vm0, %v39_v2  ;;  %415 = vmatprep.mubr.msk.f32.mxu0 %vm40_vm0, %v21_v1 }
   0x5   :  { %10 = vsyncpa [#allocation5], 0  ;;  %401 = vmatprep.subr.msk.mxu0 %vm40_vm0, %v38_v3  ;;  %v37_v6 = vld [vmem:[%s565_s1 + $0x28] sm:$0xff]  ;;  %v36_v7 = vld [vmem:[%s565_s1 + $0x20] sm:$0xff]  ;;  %vm27_vm2 = vcmask 523264   ;;  %s455_s15 = smov [#allocation4]  }
   0x6   :  { %421 = vmatmul.mubr.msk.f32.vlgmr.msra.gmra.mxu1 %vm40_vm0, %v22_v5  ;;  %v35_v8 = vld [vmem:[%s565_s1 + $0x18] sm:$0xff]  ;;  %v34_v9 = vld [vmem:[%s565_s1 + $0x10] sm:$0xff]  ;;  %v33_v10 = vld [vmem:[%s565_s1 + $0x8] sm:$0xff]  ;;  %29 = vst.msk [vmem:[#allocation3 + $0x8] sm:$0xff] %vm27_vm2, %v454_v4  ;;  %s356_s16 = sshll.u32 %s455_s15, 4  ;;  %s357_s16 = int_to_ptr.vmem [resolvable:$true] %s356_s16 }
   0x7   :  { %v32_v11 = vld [vmem:[%s565_s1] sm:$0xff]  ;;  %28 = vst.msk [vmem:[#allocation3] sm:$0xff] %vm27_vm2, %v454_v4  ;;  %s432_s17 = scalar_lea.vmem %s357_s16, 256  ;;  %p437_p1 = scmp.lt.s32.totalorder %s357_s16, %s357_s16 }
   0x8   :  { %402 = vmatpush3.xpose.msk.msra.mxu0 %vm40_vm0, %v38_v3  ;;  %v253_v12 = vld [vmem:[%s567_s3] sm:$0xff]  ;;  %v163_v13 = vld [vmem:[#allocation2 + $0x8] sm:$0xff]  ;;  %p433_p0 = scmp.ne.s32.totalorder %s357_s16, %s432_s17  ;;  %p438_p2 = scmp.lt.s32.totalorder %s432_s17, %s432_s17 }
   0x9   :  { %403 = vmatprep.subr.msk.mxu0 %vm40_vm0, %v37_v6  ;;  %423 = vmatprep.subr.mxu1 %v253_v12  ;;  %v162_v15 = vld [vmem:[#allocation2] sm:$0xff] }
   0xa   :  { %424 = vmatpush3.msra.mxu1 %v253_v12  ;;  %v382_v29 = vld [vmem:[%s568_s4] ss:$0 sm:$0xff]  ;;  %p439_p3 = por %p438_p2, %p437_p1 }
   0xc   :  { %404 = vmatpush3.xpose.msk.msra.mxu0 %vm40_vm0, %v37_v6  ;;  %p440_p4 = pnand %p439_p3, %p433_p0 }
   0xd   :  { %405 = vmatprep.subr.msk.mxu0 %vm40_vm0, %v36_v7  ;;  %v31_v21 = vld [vmem:[#allocation3 + $0x8] sm:$0xff] }
   0xe   :  { %v30_v23 = vld [vmem:[#allocation3] sm:$0xff] }
  0x10   :  { %406 = vmatpush3.xpose.msk.msra.mxu0 %vm40_vm0, %v36_v7 }
  0x11   :  { %407 = vmatprep.subr.msk.mxu0 %vm40_vm0, %v35_v8 }
  0x14   :  { %408 = vmatpush3.xpose.msk.msra.mxu0 %vm40_vm0, %v35_v8 }
  0x15   :  { %409 = vmatprep.subr.msk.mxu0 %vm40_vm0, %v34_v9 }
  0x18   :  { %410 = vmatpush3.xpose.msk.msra.mxu0 %vm40_vm0, %v34_v9 }
  0x19   :  { %411 = vmatprep.subr.msk.mxu0 %vm40_vm0, %v33_v10 }
  0x1c   :  { %412 = vmatpush3.xpose.msk.msra.mxu0 %vm40_vm0, %v33_v10 }
  0x1d   :  { %413 = vmatprep.subr.msk.mxu0 %vm40_vm0, %v32_v11 }
  0x20   :  { %414 = vmatpush3.xpose.msk.msra.mxu0 %vm40_vm0, %v32_v11 }
  0x23   :  { %416 = vmatmul.mubr.msk.f32.vlgmr.msra.gmra.mxu0 %vm40_vm0, %v22_v5 }
  0xc6   :  { %v422_v14 = vpop.f32.mrf.mxu1 }
  0xc7   :  { %v244_v16 = vadd.f32 %v422_v14, %v163_v13 }
  0xc8   :  { %v234_v17 = vpop.f32.mrf.mxu1 }
  0xc9   :  { %247 = vst.msk [vmem:[#allocation2 + $0x8] sm:$0xff] %vm156_vm1, %v244_v16  ;;  %v243_v18 = vadd.f32 %v234_v17, %v162_v15 }
  0xcb   :  { %246 = vst.msk [vmem:[#allocation2] sm:$0xff] %vm156_vm1, %v243_v18 }
  0xd0   :  { %v252_v20 = vld [vmem:[#allocation2 + $0x8] sm:$0xff] }
  0xd2   :  { %v251_v19 = vld [vmem:[#allocation2] sm:$0xff] }
  0xd3   :  { %425 = vmatprep.mubr.msk.f32.mxu1 %vm156_vm1, %v251_v19 }
  0xd4   :  { %426 = vmatmul.mubr.msk.f32.vlgmr.msra.gmra.mxu1 %vm156_vm1, %v252_v20 }
  0xe3   :  { %v417_v22 = vpop.f32.mrf.mxu0 }
  0xe4   :  { %v147_v24 = vadd.f32 %v417_v22, %v31_v21 }
  0xe5   :  { %v137_v25 = vpop.f32.mrf.mxu0 }
  0xe6   :  { %150 = vst.msk [vmem:[#allocation3 + $0x8] sm:$0xff] %vm27_vm2, %v147_v24  ;;  %v146_v26 = vadd.f32 %v137_v25, %v30_v23 }
  0xe8   :  { %149 = vst.msk [vmem:[#allocation3] sm:$0xff] %vm27_vm2, %v146_v26 }
  0xed   :  { %v337_v27 = vld [vmem:[#allocation3 + $0x8] sm:$0xff] }
  0xef   :  { %v336_v32 = vld [vmem:[#allocation3] sm:$0xff] }
 0x194   :  { %v427_v28 = vpop.f32.mrf.mxu1 }
 0x195   :  { %v339_v30 = vadd.f32 %v427_v28, %v337_v27 }
 0x196   :  { %v327_v31 = vpop.f32.mrf.mxu1 }
 0x197   :  { %v348_v33 = vadd.f32 %v382_v29, %v339_v30  ;;  %v338_v34 = vadd.f32 %v336_v32, %v327_v31 }
 0x199   :  { %350 = vst.msk [vmem:[#allocation4 + $0x8] sm:$0xff] %vm27_vm2, %v348_v33  ;;  %v347_v35 = vadd.f32 %v382_v29, %v338_v34 }
 0x19b   :  { %349 = vst.msk [vmem:[#allocation4] sm:$0xff] %vm27_vm2, %v347_v35 }
 0x19c   :  { %443 = shalt.err (!%p440_p4)
}
 0x19d   :  { %s456_s4 = smov 128   ;;  %s457_s18 = smov 8  }
 0x19e   :  { %362 = dma.vmem_to_hbm [thread:$0]  %s357_s16, 256, %s569_s5, [#allocation5], %s456_s4, %s456_s4, %s457_s18  }
 0x19f   :  { %452 = dma.done.wait [#allocation5], 256  }
 0x1a0   :  { %453 = vsyncadd [#allocation5], 4294967040 }
 0x1a1   :  { %366 = vsyncpa [#allocation5], 1 }

</bundles_post_ra>
